<compile_context>
chip_gen: v6e
topology: v6e:2x2x1
jax: 0.10.0
libtpu: 0.0.40
codegen_flags: <defaults>
</compile_context>

<pallas_src>
import math

import numpy as np
import jax
import jax.numpy as jnp
from jax.experimental import pallas as pl
from jax.experimental.pallas import tpu as pltpu

D_MODEL = 32
NHEAD = 4
HEAD_DIM = D_MODEL // NHEAD
LN_EPS = 1e-5


def _cross_attn_kernel(tgt_ref, mem_ref, qpos_ref, pos_ref, bias_ref,
                       wq_ref, wk_ref, wv_ref, wo_ref,
                       bq_ref, bk_ref, bv_ref, bo_ref,
                       gamma_ref, beta_ref,
                       out_ref):
    # tgt/qpos: (L*N, E) token-major; mem/pos: (S*N, E); bias: (L*N, S*N).
    LN, E = tgt_ref.shape
    SN = mem_ref.shape[0]

    tgt = tgt_ref[...].astype(jnp.float32)
    q_in = tgt + qpos_ref[...].astype(jnp.float32)
    mem = mem_ref[...].astype(jnp.float32)
    k_in = mem + pos_ref[...].astype(jnp.float32)

    # Input projections.  Weights are pre-transposed (and Wq/bq pre-scaled by
    # 1/sqrt(head_dim)) in the wrapper, so these are plain x @ W_t + b.
    q = jnp.dot(q_in, wq_ref[...], preferred_element_type=jnp.float32) + bq_ref[...]
    k = jnp.dot(k_in, wk_ref[...], preferred_element_type=jnp.float32) + bk_ref[...]
    v = jnp.dot(mem, wv_ref[...], preferred_element_type=jnp.float32) + bv_ref[...]

    kt = k.T                      # (E, S*N): one 2-D transpose instead of one per head.
    bias = bias_ref[...]          # 0 for same-batch pairs, -1e30 for cross-batch pairs.

    # Per-head attention with the batch folded into the score matrix; the output
    # projection is fused into the head loop (accumulate O_h @ Wo^T[h-block]).
    proj = jnp.zeros((LN, E), jnp.float32)
    for h in range(NHEAD):        # small static loop
        lo = h * HEAD_DIM
        hi = lo + HEAD_DIM
        qh = q[:, lo:hi]          # (L*N, Hd)  (already scaled)
        kth = kt[lo:hi, :]        # (Hd, S*N)
        vh = v[:, lo:hi]          # (S*N, Hd)

        s = jnp.dot(qh, kth, preferred_element_type=jnp.float32) + bias   # (L*N, S*N)
        s = s - jnp.max(s, axis=-1, keepdims=True)
        p = jnp.exp(s)
        p = p * pl.reciprocal(jnp.sum(p, axis=-1, keepdims=True), approx=True)

        oh = jnp.dot(p, vh, preferred_element_type=jnp.float32)           # (L*N, Hd)
        proj = proj + jnp.dot(oh, wo_ref[lo:hi, :],
                              preferred_element_type=jnp.float32)
    proj = proj + bo_ref[...]

    # Residual (dropout = 0) + LayerNorm over the feature dim.
    x = tgt + proj
    mu = jnp.mean(x, axis=-1, keepdims=True)
    xc = x - mu
    var = jnp.mean(xc * xc, axis=-1, keepdims=True)
    y = xc * jax.lax.rsqrt(var + LN_EPS) * gamma_ref[...] + beta_ref[...]

    out_ref[...] = y.astype(out_ref.dtype)


@jax.jit
def cross_attention_layer(tgt, memory, params, pos=None, query_pos=None):
    """tgt: (L, N, E), memory: (S, N, E)  ->  (L, N, E)   (matches the PyTorch module)."""
    L, N, E = tgt.shape
    S = memory.shape[0]
    assert E == D_MODEL
    LN, SN = L * N, S * N

    if query_pos is None:
        query_pos = jnp.zeros_like(tgt)
    if pos is None:
        pos = jnp.zeros_like(memory)

    scale = 1.0 / math.sqrt(HEAD_DIM)
    wq_t = params["wq"].T * scale          # scale folded into Wq / bq
    wk_t = params["wk"].T
    wv_t = params["wv"].T
    wo_t = params["wo"].T
    bq = (params["bq"] * scale).reshape(1, E)
    bk = params["bk"].reshape(1, E)
    bv = params["bv"].reshape(1, E)
    bo = params["bo"].reshape(1, E)
    gamma = params["ln_gamma"].reshape(1, E)
    beta = params["ln_beta"].reshape(1, E)

    # Additive mask enabling the batch-fused score matrix: row token i belongs to
    # batch i % N, column token j to batch j % N; cross-batch pairs get -1e30.
    # Trace-time constant (numpy), embedded in the executable.
    row_b = np.arange(LN) % N
    col_b = np.arange(SN) % N
    batch_bias = jnp.asarray(
        np.where(row_b[:, None] == col_b[None, :], 0.0, -1e30).astype(np.float32))

    # Contiguous (free) reshapes only — no transposes through HBM.
    tgt2 = tgt.reshape(LN, E)
    qpos2 = query_pos.reshape(LN, E)
    mem2 = memory.reshape(SN, E)
    pos2 = pos.reshape(SN, E)

    def full(shp):
        return pl.BlockSpec(shp, lambda i, _s=shp: (0,) * len(_s))

    out2 = pl.pallas_call(
        _cross_attn_kernel,
        out_shape=jax.ShapeDtypeStruct((LN, E), tgt.dtype),
        grid=(1,),
        in_specs=[full((LN, E)), full((SN, E)), full((LN, E)), full((SN, E)),
                  full((LN, SN)),
                  full((E, E)), full((E, E)), full((E, E)), full((E, E)),
                  full((1, E)), full((1, E)), full((1, E)), full((1, E)),
                  full((1, E)), full((1, E))],
        out_specs=full((LN, E)),
        compiler_params=pltpu.CompilerParams(
            dimension_semantics=("arbitrary",)),
    )(tgt2, mem2, qpos2, pos2, batch_bias,
      wq_t, wk_t, wv_t, wo_t,
      bq, bk, bv, bo,
      gamma, beta)

    return out2.reshape(L, N, E)


def _xavier_uniform(key, shape):
    fan_out, fan_in = shape
    limit = math.sqrt(6.0 / (fan_in + fan_out))
    return jax.random.uniform(key, shape, jnp.float32, -limit, limit)


def init_params(key, d_model=D_MODEL):
    keys = jax.random.split(key, 4)
    # nn.MultiheadAttention: in_proj_weight is a single (3E, E) xavier-initialized matrix.
    in_proj = _xavier_uniform(keys[0], (3 * d_model, d_model))
    wq, wk, wv = jnp.split(in_proj, 3, axis=0)
    wo = _xavier_uniform(keys[1], (d_model, d_model))
    zeros = jnp.zeros((d_model,), jnp.float32)
    return {
        "wq": wq, "wk": wk, "wv": wv,
        "bq": zeros, "bk": zeros, "bv": zeros,
        "wo": wo, "bo": zeros,
        "ln_gamma": jnp.ones((d_model,), jnp.float32),
        "ln_beta": zeros,
    }


def _reference(tgt, memory, params, pos, query_pos):
    # Pure-JAX reference of the same forward pass (seq-first layout).
    E = D_MODEL
    q_in = tgt + query_pos
    k_in = memory + pos
    q = jnp.einsum("lne,fe->lnf", q_in, params["wq"]) + params["bq"]
    k = jnp.einsum("sne,fe->snf", k_in, params["wk"]) + params["bk"]
    v = jnp.einsum("sne,fe->snf", memory, params["wv"]) + params["bv"]
    L, N, _ = q.shape
    S = k.shape[0]
    qh = q.reshape(L, N, NHEAD, HEAD_DIM)
    kh = k.reshape(S, N, NHEAD, HEAD_DIM)
    vh = v.reshape(S, N, NHEAD, HEAD_DIM)
    scores = jnp.einsum("lnhd,snhd->nhls", qh, kh) / math.sqrt(HEAD_DIM)
    p = jax.nn.softmax(scores, axis=-1)
    o = jnp.einsum("nhls,snhd->lnhd", p, vh).reshape(L, N, E)
    o = jnp.einsum("lne,fe->lnf", o, params["wo"]) + params["bo"]
    x = tgt + o
    mu = jnp.mean(x, axis=-1, keepdims=True)
    var = jnp.mean((x - mu) ** 2, axis=-1, keepdims=True)
    return (x - mu) / jnp.sqrt(var + LN_EPS) * params["ln_gamma"] + params["ln_beta"]


if __name__ == "__main__":
    key = jax.random.PRNGKey(0)
    k_p, k_t, k_m, k_qp, k_pos = jax.random.split(key, 5)

    L, S, N = 8, 8, 2  # tgt seq len, memory seq len, batch
    params = init_params(k_p)

    tgt = jax.random.normal(k_t, (L, N, D_MODEL), jnp.float32)
    memory = jax.random.normal(k_m, (S, N, D_MODEL), jnp.float32)
    query_pos = jax.random.normal(k_qp, (L, N, D_MODEL), jnp.float32)
    pos = jax.random.normal(k_pos, (S, N, D_MODEL), jnp.float32)

    out = cross_attention_layer(tgt, memory, params, pos=pos, query_pos=query_pos)
    out = jax.block_until_ready(out)

    ref = _reference(tgt, memory, params, pos, query_pos)
    assert out.shape == (L, N, D_MODEL)
    assert jnp.allclose(out, ref, atol=2e-3, rtol=2e-3), "mismatch vs reference"

    print("KERNEL_OK")
</pallas_src>

<mosaic_0001>
module attributes {stable_mosaic.version = 11 : i64} {
  func.func @_cross_attn_kernel(%arg0: i32, %arg1: memref<16x32xf32, #tpu.memory_space<vmem>>, %arg2: memref<16x32xf32, #tpu.memory_space<vmem>>, %arg3: memref<16x32xf32, #tpu.memory_space<vmem>>, %arg4: memref<16x32xf32, #tpu.memory_space<vmem>>, %arg5: memref<16x16xf32, #tpu.memory_space<vmem>>, %arg6: memref<32x32xf32, #tpu.memory_space<vmem>>, %arg7: memref<32x32xf32, #tpu.memory_space<vmem>>, %arg8: memref<32x32xf32, #tpu.memory_space<vmem>>, %arg9: memref<32x32xf32, #tpu.memory_space<vmem>>, %arg10: memref<1x32xf32, #tpu.memory_space<vmem>>, %arg11: memref<1x32xf32, #tpu.memory_space<vmem>>, %arg12: memref<1x32xf32, #tpu.memory_space<vmem>>, %arg13: memref<1x32xf32, #tpu.memory_space<vmem>>, %arg14: memref<1x32xf32, #tpu.memory_space<vmem>>, %arg15: memref<1x32xf32, #tpu.memory_space<vmem>>, %arg16: memref<16x32xf32, #tpu.memory_space<vmem>>) attributes {dimension_semantics = [#tpu.dimension_semantics<arbitrary>], iteration_bounds = array<i64: 1>, scalar_prefetch = 0 : i64, scratch_operands = 0 : i64, tpu.core_type = #tpu.core_type<tc>, window_params = [{pipeline_mode = #tpu.pipeline_mode<synchronous>, transform_indices = @transform_0, window_bounds = array<i64: 16, 32>}, {pipeline_mode = #tpu.pipeline_mode<synchronous>, transform_indices = @transform_1, window_bounds = array<i64: 16, 32>}, {pipeline_mode = #tpu.pipeline_mode<synchronous>, transform_indices = @transform_2, window_bounds = array<i64: 16, 32>}, {pipeline_mode = #tpu.pipeline_mode<synchronous>, transform_indices = @transform_3, window_bounds = array<i64: 16, 32>}, {pipeline_mode = #tpu.pipeline_mode<synchronous>, transform_indices = @transform_4, window_bounds = array<i64: 16, 16>}, {pipeline_mode = #tpu.pipeline_mode<synchronous>, transform_indices = @transform_5, window_bounds = array<i64: 32, 32>}, {pipeline_mode = #tpu.pipeline_mode<synchronous>, transform_indices = @transform_6, window_bounds = array<i64: 32, 32>}, {pipeline_mode = #tpu.pipeline_mode<synchronous>, transform_indices = @transform_7, window_bounds = array<i64: 32, 32>}, {pipeline_mode = #tpu.pipeline_mode<synchronous>, transform_indices = @transform_8, window_bounds = array<i64: 32, 32>}, {pipeline_mode = #tpu.pipeline_mode<synchronous>, transform_indices = @transform_9, window_bounds = array<i64: 1, 32>}, {pipeline_mode = #tpu.pipeline_mode<synchronous>, transform_indices = @transform_10, window_bounds = array<i64: 1, 32>}, {pipeline_mode = #tpu.pipeline_mode<synchronous>, transform_indices = @transform_11, window_bounds = array<i64: 1, 32>}, {pipeline_mode = #tpu.pipeline_mode<synchronous>, transform_indices = @transform_12, window_bounds = array<i64: 1, 32>}, {pipeline_mode = #tpu.pipeline_mode<synchronous>, transform_indices = @transform_13, window_bounds = array<i64: 1, 32>}, {pipeline_mode = #tpu.pipeline_mode<synchronous>, transform_indices = @transform_14, window_bounds = array<i64: 1, 32>}, {pipeline_mode = #tpu.pipeline_mode<synchronous>, transform_indices = @transform_15, window_bounds = array<i64: 16, 32>}]} {
    %c0 = arith.constant 0 : index
    %c0_0 = arith.constant 0 : index
    %0 = vector.load %arg1[%c0, %c0_0] : memref<16x32xf32, #tpu.memory_space<vmem>>, vector<16x32xf32>
    %c0_1 = arith.constant 0 : index
    %c0_2 = arith.constant 0 : index
    %1 = vector.load %arg3[%c0_1, %c0_2] : memref<16x32xf32, #tpu.memory_space<vmem>>, vector<16x32xf32>
    %2 = arith.addf %0, %1 : vector<16x32xf32>
    %c0_3 = arith.constant 0 : index
    %c0_4 = arith.constant 0 : index
    %3 = vector.load %arg2[%c0_3, %c0_4] : memref<16x32xf32, #tpu.memory_space<vmem>>, vector<16x32xf32>
    %c0_5 = arith.constant 0 : index
    %c0_6 = arith.constant 0 : index
    %4 = vector.load %arg4[%c0_5, %c0_6] : memref<16x32xf32, #tpu.memory_space<vmem>>, vector<16x32xf32>
    %5 = arith.addf %3, %4 : vector<16x32xf32>
    %c0_7 = arith.constant 0 : index
    %c0_8 = arith.constant 0 : index
    %6 = vector.load %arg6[%c0_7, %c0_8] : memref<32x32xf32, #tpu.memory_space<vmem>>, vector<32x32xf32>
    %cst = arith.constant dense<0.000000e+00> : vector<16x32xf32>
    %7 = tpu.matmul %2, %6, %cst {dimension_numbers = #tpu.dot_dimension_numbers<[1], [0], [0], [1], [0, 0, 1, 1], [], []>} : vector<16x32xf32>, vector<32x32xf32>, vector<16x32xf32> -> vector<16x32xf32>
    %c0_9 = arith.constant 0 : index
    %c0_10 = arith.constant 0 : index
    %8 = vector.load %arg10[%c0_9, %c0_10] : memref<1x32xf32, #tpu.memory_space<vmem>>, vector<1x32xf32>
    %9 = vector.broadcast %8 : vector<1x32xf32> to vector<16x32xf32>
    %10 = arith.addf %7, %9 : vector<16x32xf32>
    %c0_11 = arith.constant 0 : index
    %c0_12 = arith.constant 0 : index
    %11 = vector.load %arg7[%c0_11, %c0_12] : memref<32x32xf32, #tpu.memory_space<vmem>>, vector<32x32xf32>
    %cst_13 = arith.constant dense<0.000000e+00> : vector<16x32xf32>
    %12 = tpu.matmul %5, %11, %cst_13 {dimension_numbers = #tpu.dot_dimension_numbers<[1], [0], [0], [1], [0, 0, 1, 1], [], []>} : vector<16x32xf32>, vector<32x32xf32>, vector<16x32xf32> -> vector<16x32xf32>
    %c0_14 = arith.constant 0 : index
    %c0_15 = arith.constant 0 : index
    %13 = vector.load %arg11[%c0_14, %c0_15] : memref<1x32xf32, #tpu.memory_space<vmem>>, vector<1x32xf32>
    %14 = vector.broadcast %13 : vector<1x32xf32> to vector<16x32xf32>
    %15 = arith.addf %12, %14 : vector<16x32xf32>
    %c0_16 = arith.constant 0 : index
    %c0_17 = arith.constant 0 : index
    %16 = vector.load %arg8[%c0_16, %c0_17] : memref<32x32xf32, #tpu.memory_space<vmem>>, vector<32x32xf32>
    %cst_18 = arith.constant dense<0.000000e+00> : vector<16x32xf32>
    %17 = tpu.matmul %3, %16, %cst_18 {dimension_numbers = #tpu.dot_dimension_numbers<[1], [0], [0], [1], [0, 0, 1, 1], [], []>} : vector<16x32xf32>, vector<32x32xf32>, vector<16x32xf32> -> vector<16x32xf32>
    %c0_19 = arith.constant 0 : index
    %c0_20 = arith.constant 0 : index
    %18 = vector.load %arg12[%c0_19, %c0_20] : memref<1x32xf32, #tpu.memory_space<vmem>>, vector<1x32xf32>
    %19 = vector.broadcast %18 : vector<1x32xf32> to vector<16x32xf32>
    %20 = arith.addf %17, %19 : vector<16x32xf32>
    %21 = tpu.transpose %15, [1, 0] : vector<16x32xf32> -> vector<32x16xf32>
    %c0_21 = arith.constant 0 : index
    %c0_22 = arith.constant 0 : index
    %22 = vector.load %arg5[%c0_21, %c0_22] : memref<16x16xf32, #tpu.memory_space<vmem>>, vector<16x16xf32>
    %cst_23 = arith.constant 0.000000e+00 : f32
    %23 = vector.broadcast %cst_23 : f32 to vector<16x32xf32>
    %24 = vector.extract_strided_slice %10 {offsets = [0, 0], sizes = [16, 8], strides = [1, 1]} : vector<16x32xf32> to vector<16x8xf32>
    %25 = vector.extract_strided_slice %21 {offsets = [0, 0], sizes = [8, 16], strides = [1, 1]} : vector<32x16xf32> to vector<8x16xf32>
    %26 = vector.extract_strided_slice %20 {offsets = [0, 0], sizes = [16, 8], strides = [1, 1]} : vector<16x32xf32> to vector<16x8xf32>
    %cst_24 = arith.constant dense<0.000000e+00> : vector<16x16xf32>
    %27 = tpu.matmul %24, %25, %cst_24 {dimension_numbers = #tpu.dot_dimension_numbers<[1], [0], [0], [1], [0, 0, 1, 1], [], []>} : vector<16x8xf32>, vector<8x16xf32>, vector<16x16xf32> -> vector<16x16xf32>
    %28 = arith.addf %27, %22 : vector<16x16xf32>
    %cst_25 = arith.constant dense<0xFF800000> : vector<16xf32>
    %29 = vector.multi_reduction <maximumf>, %28, %cst_25 [1] : vector<16x16xf32> to vector<16xf32>
    %30 = vector.shape_cast %29 : vector<16xf32> to vector<16x1xf32>
    %31 = vector.broadcast %30 : vector<16x1xf32> to vector<16x16xf32>
    %32 = arith.subf %28, %31 : vector<16x16xf32>
    %33 = math.exp %32 : vector<16x16xf32>
    %cst_26 = arith.constant dense<0.000000e+00> : vector<16xf32>
    %34 = vector.multi_reduction <add>, %33, %cst_26 [1] : vector<16x16xf32> to vector<16xf32>
    %35 = vector.shape_cast %34 : vector<16xf32> to vector<16x1xf32>
    %36 = tpu.reciprocal %35 {approx = true} : vector<16x1xf32> -> vector<16x1xf32>
    %37 = vector.broadcast %36 : vector<16x1xf32> to vector<16x16xf32>
    %38 = arith.mulf %33, %37 : vector<16x16xf32>
    %cst_27 = arith.constant dense<0.000000e+00> : vector<16x8xf32>
    %39 = tpu.matmul %38, %26, %cst_27 {dimension_numbers = #tpu.dot_dimension_numbers<[1], [0], [0], [1], [0, 0, 1, 1], [], []>} : vector<16x16xf32>, vector<16x8xf32>, vector<16x8xf32> -> vector<16x8xf32>
    %c0_28 = arith.constant 0 : index
    %c0_29 = arith.constant 0 : index
    %40 = vector.load %arg9[%c0_28, %c0_29] : memref<32x32xf32, #tpu.memory_space<vmem>>, vector<8x32xf32>
    %cst_30 = arith.constant dense<0.000000e+00> : vector<16x32xf32>
    %41 = tpu.matmul %39, %40, %cst_30 {dimension_numbers = #tpu.dot_dimension_numbers<[1], [0], [0], [1], [0, 0, 1, 1], [], []>} : vector<16x8xf32>, vector<8x32xf32>, vector<16x32xf32> -> vector<16x32xf32>
    %42 = arith.addf %23, %41 : vector<16x32xf32>
    %43 = vector.extract_strided_slice %10 {offsets = [0, 8], sizes = [16, 8], strides = [1, 1]} : vector<16x32xf32> to vector<16x8xf32>
    %44 = vector.extract_strided_slice %21 {offsets = [8, 0], sizes = [8, 16], strides = [1, 1]} : vector<32x16xf32> to vector<8x16xf32>
    %45 = vector.extract_strided_slice %20 {offsets = [0, 8], sizes = [16, 8], strides = [1, 1]} : vector<16x32xf32> to vector<16x8xf32>
    %cst_31 = arith.constant dense<0.000000e+00> : vector<16x16xf32>
    %46 = tpu.matmul %43, %44, %cst_31 {dimension_numbers = #tpu.dot_dimension_numbers<[1], [0], [0], [1], [0, 0, 1, 1], [], []>} : vector<16x8xf32>, vector<8x16xf32>, vector<16x16xf32> -> vector<16x16xf32>
    %47 = arith.addf %46, %22 : vector<16x16xf32>
    %cst_32 = arith.constant dense<0xFF800000> : vector<16xf32>
    %48 = vector.multi_reduction <maximumf>, %47, %cst_32 [1] : vector<16x16xf32> to vector<16xf32>
    %49 = vector.shape_cast %48 : vector<16xf32> to vector<16x1xf32>
    %50 = vector.broadcast %49 : vector<16x1xf32> to vector<16x16xf32>
    %51 = arith.subf %47, %50 : vector<16x16xf32>
    %52 = math.exp %51 : vector<16x16xf32>
    %cst_33 = arith.constant dense<0.000000e+00> : vector<16xf32>
    %53 = vector.multi_reduction <add>, %52, %cst_33 [1] : vector<16x16xf32> to vector<16xf32>
    %54 = vector.shape_cast %53 : vector<16xf32> to vector<16x1xf32>
    %55 = tpu.reciprocal %54 {approx = true} : vector<16x1xf32> -> vector<16x1xf32>
    %56 = vector.broadcast %55 : vector<16x1xf32> to vector<16x16xf32>
    %57 = arith.mulf %52, %56 : vector<16x16xf32>
    %cst_34 = arith.constant dense<0.000000e+00> : vector<16x8xf32>
    %58 = tpu.matmul %57, %45, %cst_34 {dimension_numbers = #tpu.dot_dimension_numbers<[1], [0], [0], [1], [0, 0, 1, 1], [], []>} : vector<16x16xf32>, vector<16x8xf32>, vector<16x8xf32> -> vector<16x8xf32>
    %c8 = arith.constant 8 : index
    %c0_35 = arith.constant 0 : index
    %59 = vector.load %arg9[%c8, %c0_35] : memref<32x32xf32, #tpu.memory_space<vmem>>, vector<8x32xf32>
    %cst_36 = arith.constant dense<0.000000e+00> : vector<16x32xf32>
    %60 = tpu.matmul %58, %59, %cst_36 {dimension_numbers = #tpu.dot_dimension_numbers<[1], [0], [0], [1], [0, 0, 1, 1], [], []>} : vector<16x8xf32>, vector<8x32xf32>, vector<16x32xf32> -> vector<16x32xf32>
    %61 = arith.addf %42, %60 : vector<16x32xf32>
    %62 = vector.extract_strided_slice %10 {offsets = [0, 16], sizes = [16, 8], strides = [1, 1]} : vector<16x32xf32> to vector<16x8xf32>
    %63 = vector.extract_strided_slice %21 {offsets = [16, 0], sizes = [8, 16], strides = [1, 1]} : vector<32x16xf32> to vector<8x16xf32>
    %64 = vector.extract_strided_slice %20 {offsets = [0, 16], sizes = [16, 8], strides = [1, 1]} : vector<16x32xf32> to vector<16x8xf32>
    %cst_37 = arith.constant dense<0.000000e+00> : vector<16x16xf32>
    %65 = tpu.matmul %62, %63, %cst_37 {dimension_numbers = #tpu.dot_dimension_numbers<[1], [0], [0], [1], [0, 0, 1, 1], [], []>} : vector<16x8xf32>, vector<8x16xf32>, vector<16x16xf32> -> vector<16x16xf32>
    %66 = arith.addf %65, %22 : vector<16x16xf32>
    %cst_38 = arith.constant dense<0xFF800000> : vector<16xf32>
    %67 = vector.multi_reduction <maximumf>, %66, %cst_38 [1] : vector<16x16xf32> to vector<16xf32>
    %68 = vector.shape_cast %67 : vector<16xf32> to vector<16x1xf32>
    %69 = vector.broadcast %68 : vector<16x1xf32> to vector<16x16xf32>
    %70 = arith.subf %66, %69 : vector<16x16xf32>
    %71 = math.exp %70 : vector<16x16xf32>
    %cst_39 = arith.constant dense<0.000000e+00> : vector<16xf32>
    %72 = vector.multi_reduction <add>, %71, %cst_39 [1] : vector<16x16xf32> to vector<16xf32>
    %73 = vector.shape_cast %72 : vector<16xf32> to vector<16x1xf32>
    %74 = tpu.reciprocal %73 {approx = true} : vector<16x1xf32> -> vector<16x1xf32>
    %75 = vector.broadcast %74 : vector<16x1xf32> to vector<16x16xf32>
    %76 = arith.mulf %71, %75 : vector<16x16xf32>
    %cst_40 = arith.constant dense<0.000000e+00> : vector<16x8xf32>
    %77 = tpu.matmul %76, %64, %cst_40 {dimension_numbers = #tpu.dot_dimension_numbers<[1], [0], [0], [1], [0, 0, 1, 1], [], []>} : vector<16x16xf32>, vector<16x8xf32>, vector<16x8xf32> -> vector<16x8xf32>
    %c16 = arith.constant 16 : index
    %c0_41 = arith.constant 0 : index
    %78 = vector.load %arg9[%c16, %c0_41] : memref<32x32xf32, #tpu.memory_space<vmem>>, vector<8x32xf32>
    %cst_42 = arith.constant dense<0.000000e+00> : vector<16x32xf32>
    %79 = tpu.matmul %77, %78, %cst_42 {dimension_numbers = #tpu.dot_dimension_numbers<[1], [0], [0], [1], [0, 0, 1, 1], [], []>} : vector<16x8xf32>, vector<8x32xf32>, vector<16x32xf32> -> vector<16x32xf32>
    %80 = arith.addf %61, %79 : vector<16x32xf32>
    %81 = vector.extract_strided_slice %10 {offsets = [0, 24], sizes = [16, 8], strides = [1, 1]} : vector<16x32xf32> to vector<16x8xf32>
    %82 = vector.extract_strided_slice %21 {offsets = [24, 0], sizes = [8, 16], strides = [1, 1]} : vector<32x16xf32> to vector<8x16xf32>
    %83 = vector.extract_strided_slice %20 {offsets = [0, 24], sizes = [16, 8], strides = [1, 1]} : vector<16x32xf32> to vector<16x8xf32>
    %cst_43 = arith.constant dense<0.000000e+00> : vector<16x16xf32>
    %84 = tpu.matmul %81, %82, %cst_43 {dimension_numbers = #tpu.dot_dimension_numbers<[1], [0], [0], [1], [0, 0, 1, 1], [], []>} : vector<16x8xf32>, vector<8x16xf32>, vector<16x16xf32> -> vector<16x16xf32>
    %85 = arith.addf %84, %22 : vector<16x16xf32>
    %cst_44 = arith.constant dense<0xFF800000> : vector<16xf32>
    %86 = vector.multi_reduction <maximumf>, %85, %cst_44 [1] : vector<16x16xf32> to vector<16xf32>
    %87 = vector.shape_cast %86 : vector<16xf32> to vector<16x1xf32>
    %88 = vector.broadcast %87 : vector<16x1xf32> to vector<16x16xf32>
    %89 = arith.subf %85, %88 : vector<16x16xf32>
    %90 = math.exp %89 : vector<16x16xf32>
    %cst_45 = arith.constant dense<0.000000e+00> : vector<16xf32>
    %91 = vector.multi_reduction <add>, %90, %cst_45 [1] : vector<16x16xf32> to vector<16xf32>
    %92 = vector.shape_cast %91 : vector<16xf32> to vector<16x1xf32>
    %93 = tpu.reciprocal %92 {approx = true} : vector<16x1xf32> -> vector<16x1xf32>
    %94 = vector.broadcast %93 : vector<16x1xf32> to vector<16x16xf32>
    %95 = arith.mulf %90, %94 : vector<16x16xf32>
    %cst_46 = arith.constant dense<0.000000e+00> : vector<16x8xf32>
    %96 = tpu.matmul %95, %83, %cst_46 {dimension_numbers = #tpu.dot_dimension_numbers<[1], [0], [0], [1], [0, 0, 1, 1], [], []>} : vector<16x16xf32>, vector<16x8xf32>, vector<16x8xf32> -> vector<16x8xf32>
    %c24 = arith.constant 24 : index
    %c0_47 = arith.constant 0 : index
    %97 = vector.load %arg9[%c24, %c0_47] : memref<32x32xf32, #tpu.memory_space<vmem>>, vector<8x32xf32>
    %cst_48 = arith.constant dense<0.000000e+00> : vector<16x32xf32>
    %98 = tpu.matmul %96, %97, %cst_48 {dimension_numbers = #tpu.dot_dimension_numbers<[1], [0], [0], [1], [0, 0, 1, 1], [], []>} : vector<16x8xf32>, vector<8x32xf32>, vector<16x32xf32> -> vector<16x32xf32>
    %99 = arith.addf %80, %98 : vector<16x32xf32>
    %c0_49 = arith.constant 0 : index
    %c0_50 = arith.constant 0 : index
    %100 = vector.load %arg13[%c0_49, %c0_50] : memref<1x32xf32, #tpu.memory_space<vmem>>, vector<1x32xf32>
    %101 = vector.broadcast %100 : vector<1x32xf32> to vector<16x32xf32>
    %102 = arith.addf %99, %101 : vector<16x32xf32>
    %103 = arith.addf %0, %102 : vector<16x32xf32>
    %cst_51 = arith.constant dense<0.000000e+00> : vector<16xf32>
    %104 = vector.multi_reduction <add>, %103, %cst_51 [1] : vector<16x32xf32> to vector<16xf32>
    %105 = vector.shape_cast %104 : vector<16xf32> to vector<16x1xf32>
    %cst_52 = arith.constant 3.200000e+01 : f32
    %106 = vector.broadcast %cst_52 : f32 to vector<16x1xf32>
    %107 = arith.divf %105, %106 : vector<16x1xf32>
    %108 = vector.broadcast %107 : vector<16x1xf32> to vector<16x32xf32>
    %109 = arith.subf %103, %108 : vector<16x32xf32>
    %110 = arith.mulf %109, %109 : vector<16x32xf32>
    %cst_53 = arith.constant dense<0.000000e+00> : vector<16xf32>
    %111 = vector.multi_reduction <add>, %110, %cst_53 [1] : vector<16x32xf32> to vector<16xf32>
    %112 = vector.shape_cast %111 : vector<16xf32> to vector<16x1xf32>
    %cst_54 = arith.constant 3.200000e+01 : f32
    %113 = vector.broadcast %cst_54 : f32 to vector<16x1xf32>
    %114 = arith.divf %112, %113 : vector<16x1xf32>
    %cst_55 = arith.constant 9.99999974E-6 : f32
    %115 = vector.broadcast %cst_55 : f32 to vector<16x1xf32>
    %116 = arith.addf %114, %115 : vector<16x1xf32>
    %117 = math.rsqrt %116 : vector<16x1xf32>
    %118 = vector.broadcast %117 : vector<16x1xf32> to vector<16x32xf32>
    %119 = arith.mulf %109, %118 : vector<16x32xf32>
    %c0_56 = arith.constant 0 : index
    %c0_57 = arith.constant 0 : index
    %120 = vector.load %arg14[%c0_56, %c0_57] : memref<1x32xf32, #tpu.memory_space<vmem>>, vector<1x32xf32>
    %121 = vector.broadcast %120 : vector<1x32xf32> to vector<16x32xf32>
    %122 = arith.mulf %119, %121 : vector<16x32xf32>
    %c0_58 = arith.constant 0 : index
    %c0_59 = arith.constant 0 : index
    %123 = vector.load %arg15[%c0_58, %c0_59] : memref<1x32xf32, #tpu.memory_space<vmem>>, vector<1x32xf32>
    %124 = vector.broadcast %123 : vector<1x32xf32> to vector<16x32xf32>
    %125 = arith.addf %122, %124 : vector<16x32xf32>
    %c0_60 = arith.constant 0 : index
    %c0_61 = arith.constant 0 : index
    %126 = vector.load %arg16[%c0_60, %c0_61] : memref<16x32xf32, #tpu.memory_space<vmem>>, vector<16x32xf32>
    tpu.vector_store %arg16[%c0_60, %c0_61], %125 {strides = array<i32>} : memref<16x32xf32, #tpu.memory_space<vmem>>, vector<16x32xf32>,
    return
  }
  func.func @transform_0(%arg0: i32) -> (i32, i32) {
    %c0_i32 = arith.constant 0 : i32
    %c0_i32_0 = arith.constant 0 : i32
    %c0_i32_1 = arith.constant 0 : i32
    return %c0_i32, %c0_i32_0 : i32, i32
  }
  func.func @transform_1(%arg0: i32) -> (i32, i32) {
    %c0_i32 = arith.constant 0 : i32
    %c0_i32_0 = arith.constant 0 : i32
    %c0_i32_1 = arith.constant 0 : i32
    return %c0_i32, %c0_i32_0 : i32, i32
  }
  func.func @transform_2(%arg0: i32) -> (i32, i32) {
    %c0_i32 = arith.constant 0 : i32
    %c0_i32_0 = arith.constant 0 : i32
    %c0_i32_1 = arith.constant 0 : i32
    return %c0_i32, %c0_i32_0 : i32, i32
  }
  func.func @transform_3(%arg0: i32) -> (i32, i32) {
    %c0_i32 = arith.constant 0 : i32
    %c0_i32_0 = arith.constant 0 : i32
    %c0_i32_1 = arith.constant 0 : i32
    return %c0_i32, %c0_i32_0 : i32, i32
  }
  func.func @transform_4(%arg0: i32) -> (i32, i32) {
    %c0_i32 = arith.constant 0 : i32
    %c0_i32_0 = arith.constant 0 : i32
    %c0_i32_1 = arith.constant 0 : i32
    return %c0_i32, %c0_i32_0 : i32, i32
  }
  func.func @transform_5(%arg0: i32) -> (i32, i32) {
    %c0_i32 = arith.constant 0 : i32
    %c0_i32_0 = arith.constant 0 : i32
    %c0_i32_1 = arith.constant 0 : i32
    return %c0_i32, %c0_i32_0 : i32, i32
  }
  func.func @transform_6(%arg0: i32) -> (i32, i32) {
    %c0_i32 = arith.constant 0 : i32
    %c0_i32_0 = arith.constant 0 : i32
    %c0_i32_1 = arith.constant 0 : i32
    return %c0_i32, %c0_i32_0 : i32, i32
  }
  func.func @transform_7(%arg0: i32) -> (i32, i32) {
    %c0_i32 = arith.constant 0 : i32
    %c0_i32_0 = arith.constant 0 : i32
    %c0_i32_1 = arith.constant 0 : i32
    return %c0_i32, %c0_i32_0 : i32, i32
  }
  func.func @transform_8(%arg0: i32) -> (i32, i32) {
    %c0_i32 = arith.constant 0 : i32
    %c0_i32_0 = arith.constant 0 : i32
    %c0_i32_1 = arith.constant 0 : i32
    return %c0_i32, %c0_i32_0 : i32, i32
  }
  func.func @transform_9(%arg0: i32) -> (i32, i32) {
    %c0_i32 = arith.constant 0 : i32
    %c0_i32_0 = arith.constant 0 : i32
    %c0_i32_1 = arith.constant 0 : i32
    return %c0_i32, %c0_i32_0 : i32, i32
  }
  func.func @transform_10(%arg0: i32) -> (i32, i32) {
    %c0_i32 = arith.constant 0 : i32
    %c0_i32_0 = arith.constant 0 : i32
    %c0_i32_1 = arith.constant 0 : i32
    return %c0_i32, %c0_i32_0 : i32, i32
  }
  func.func @transform_11(%arg0: i32) -> (i32, i32) {
    %c0_i32 = arith.constant 0 : i32
    %c0_i32_0 = arith.constant 0 : i32
    %c0_i32_1 = arith.constant 0 : i32
    return %c0_i32, %c0_i32_0 : i32, i32
  }
  func.func @transform_12(%arg0: i32) -> (i32, i32) {
    %c0_i32 = arith.constant 0 : i32
    %c0_i32_0 = arith.constant 0 : i32
    %c0_i32_1 = arith.constant 0 : i32
    return %c0_i32, %c0_i32_0 : i32, i32
  }
  func.func @transform_13(%arg0: i32) -> (i32, i32) {
    %c0_i32 = arith.constant 0 : i32
    %c0_i32_0 = arith.constant 0 : i32
    %c0_i32_1 = arith.constant 0 : i32
    return %c0_i32, %c0_i32_0 : i32, i32
  }
  func.func @transform_14(%arg0: i32) -> (i32, i32) {
    %c0_i32 = arith.constant 0 : i32
    %c0_i32_0 = arith.constant 0 : i32
    %c0_i32_1 = arith.constant 0 : i32
    return %c0_i32, %c0_i32_0 : i32, i32
  }
  func.func @transform_15(%arg0: i32) -> (i32, i32) {
    %c0_i32 = arith.constant 0 : i32
    %c0_i32_0 = arith.constant 0 : i32
    %c0_i32_1 = arith.constant 0 : i32
    return %c0_i32, %c0_i32_0 : i32, i32
  }
}

</mosaic_0001>

<bundles_post_ra>
// kernel: cross_attention_layer.1
= control target key start
LH: loop header
LB: loop body
LE: loop exit
PB: predicated region body
PF: predicated region fallthrough
CT: control target
= control target key end

     0   :  { %vm74_vm0 = vcmask 261120   ;;  %s2158_s0 = inlined_call_operand.vmem [shape: f32[16,32], index: 0, kind: input, shape index: {}]   ;;  %s2159_s1 = inlined_call_operand.vmem [shape: f32[16,32], index: 1, kind: input, shape index: {}]   ;;  %s2160_s2 = inlined_call_operand.vmem [shape: f32[16,32], index: 2, kind: input, shape index: {}]   ;;  %s2161_s3 = inlined_call_operand.vmem [shape: f32[16,32], index: 3, kind: input, shape index: {}]   ;;  %s2162_s4 = inlined_call_operand.vmem [shape: f32[16,16], index: 4, kind: input, shape index: {}]   ;;  %s2163_s5 = inlined_call_operand.vmem [shape: f32[32,32], index: 5, kind: input, shape index: {}]   ;;  %s2164_s6 = inlined_call_operand.vmem [shape: f32[32,32], index: 6, kind: input, shape index: {}]   ;;  %s2165_s7 = inlined_call_operand.vmem [shape: f32[32,32], index: 7, kind: input, shape index: {}]   ;;  %s2166_s8 = inlined_call_operand.vmem [shape: f32[32,32], index: 8, kind: input, shape index: {}]   ;;  %s2167_s9 = inlined_call_operand.vmem [shape: f32[1,32], index: 9, kind: input, shape index: {}]   ;;  %s2168_s10 = inlined_call_operand.vmem [shape: f32[1,32], index: 10, kind: input, shape index: {}]   ;;  %s2169_s11 = inlined_call_operand.vmem [shape: f32[1,32], index: 11, kind: input, shape index: {}]   ;;  %s2170_s12 = inlined_call_operand.vmem [shape: f32[1,32], index: 12, kind: input, shape index: {}]   ;;  %s2171_s13 = inlined_call_operand.vmem [shape: f32[1,32], index: 13, kind: input, shape index: {}]   ;;  %s2172_s14 = inlined_call_operand.vmem [shape: f32[1,32], index: 14, kind: input, shape index: {}]   ;;  %s2173_s15 = inlined_call_operand.hbm [shape: f32[16,32], index: 15, kind: output, shape index: {}]  }
   0x1   :  { %v66_v0 = vld [vmem:[%s2163_s5 + $0x18] sm:$0xff]  ;;  %v65_v2 = vld [vmem:[%s2163_s5 + $0x10] sm:$0xff]  ;;  %v64_v4 = vld [vmem:[%s2163_s5 + $0x8] sm:$0xff] }
   0x2   :  { %v159_v1 = vld [vmem:[%s2164_s6 + $0x18] sm:$0xff]  ;;  %1648 = vmatprep.subr.mxu0 %v66_v0  ;;  %v158_v3 = vld [vmem:[%s2164_s6 + $0x10] sm:$0xff]  ;;  %v157_v5 = vld [vmem:[%s2164_s6 + $0x8] sm:$0xff] }
   0x3   :  { %1659 = vmatprep.subr.mxu1 %v159_v1  ;;  %1649 = vmatpush3.msra.mxu0 %v66_v0  ;;  %v63_v6 = vld [vmem:[%s2163_s5] sm:$0xff]  ;;  %v1949_v13 = vld [vmem:[%s2158_s0 + $0x8] sm:$0xff] }
   0x4   :  { %1660 = vmatpush3.msra.mxu1 %v159_v1  ;;  %v156_v7 = vld [vmem:[%s2164_s6] sm:$0xff]  ;;  %1650 = vmatprep.subr.mxu0 %v65_v2  ;;  %v54_v14 = vld [vmem:[%s2160_s2 + $0x8] sm:$0xff] }
   0x5   :  { %v1934_v8 = vld [vmem:[%s2158_s0] sm:$0xff]  ;;  %1661 = vmatprep.subr.mxu1 %v158_v3  ;;  %1651 = vmatpush3.msra.mxu0 %v65_v2  ;;  %v58_v15 = vld [vmem:[%s2159_s1 + $0x8] sm:$0xff] }
   0x6   :  { %v53_v9 = vld [vmem:[%s2160_s2] sm:$0xff]  ;;  %1662 = vmatpush3.msra.mxu1 %v158_v3  ;;  %1652 = vmatprep.subr.mxu0 %v64_v4  ;;  %v60_v17 = vld [vmem:[%s2161_s3 + $0x8] sm:$0xff] }
   0x7   :  { %v57_v10 = vld [vmem:[%s2159_s1] sm:$0xff]  ;;  %v55_v12 = vadd.f32 %v53_v9, %v1934_v8  ;;  %1663 = vmatprep.subr.mxu1 %v157_v5 }
   0x8   :  { %v59_v11 = vld [vmem:[%s2161_s3] sm:$0xff] }
   0x9   :  { %v61_v16 = vadd.f32 %v59_v11, %v57_v10 }
   0xa   :  { %20 = vsyncpa [#allocation3], 0  ;;  %1653 = vmatpush3.msra.mxu0 %v64_v4  ;;  %1664 = vmatpush3.msra.mxu1 %v157_v5  ;;  %v56_v18 = vadd.f32 %v54_v14, %v1949_v13  ;;  %v62_v19 = vadd.f32 %v60_v17, %v58_v15  ;;  %v1545_v20 = vld [vmem:[%s2168_s10] ss:$0 sm:$0xff]  ;;  %vm342_vm1 = vcmask 64512   ;;  %s1821_s18 = smov 120  }
   0xb   :  { %1654 = vmatprep.subr.mxu0 %v63_v6  ;;  %1665 = vmatprep.subr.mxu1 %v156_v7  ;;  %v1542_v22 = vld [vmem:[%s2167_s9] ss:$0 sm:$0xff]  ;;  %v251_v30 = vld [vmem:[%s2165_s7 + $0x18] sm:$0xff]  ;;  %v250_v31 = vld [vmem:[%s2165_s7 + $0x10] sm:$0xff]  ;;  %vm430_vm2 = vcmask 130048   ;;  %s1823_s27 = smov 104  }
   0xc   :  { %1655 = vmatpush3.msra.mxu0 %v63_v6  ;;  %1656 = vmatprep.mubr.msk.f32.mxu0 %vm74_vm0, %v55_v12  ;;  %v249_v32 = vld [vmem:[%s2165_s7 + $0x8] sm:$0xff]  ;;  %v248_v33 = vld [vmem:[%s2165_s7] sm:$0xff]  ;;  %s1824_s19 = smov [#allocation2]  }
   0xd   :  { %1666 = vmatpush3.msra.mxu1 %v156_v7  ;;  %1667 = vmatprep.mubr.msk.f32.mxu1 %vm74_vm0, %v61_v16  ;;  %v2022_v38 = vld [vmem:[%s2162_s4 + $0x8] sm:$0xff]  ;;  %v2027_v40 = vld [vmem:[%s2162_s4] sm:$0xff]  ;;  %s1531_s20 = sshll.u32 %s1824_s19, 4  ;;  %s1532_s20 = int_to_ptr.vmem [resolvable:$true] %s1531_s20 }
   0xe   :  { %1657 = vmatmul.mubr.msk.f32.vlgmr.msra.gmra.mxu0 %vm74_vm0, %v56_v18  ;;  %1668 = vmatmul.mubr.msk.f32.vlgmr.msra.gmra.mxu1 %vm74_vm0, %v62_v19  ;;  %v1548_v59 = vld [vmem:[%s2169_s11] ss:$0 sm:$0xff]  ;;  %s1822_s11 = smov 112   ;;  %s1799_s21 = scalar_lea.vmem %s1532_s20, 256 }
   0xf   :  { %1678 = vmatprep.mubr.msk.f32.mxu0 %vm74_vm0, %v57_v10  ;;  %1670 = vmatprep.subr.mxu0 %v251_v30  ;;  %p1800_p0 = scmp.ne.s32.totalorder %s1532_s20, %s1799_s21  ;;  %p1804_p1 = scmp.lt.s32.totalorder %s1532_s20, %s1532_s20 }
  0x10   :  { %1671 = vmatpush3.msra.mxu0 %v251_v30  ;;  %p1805_p2 = scmp.lt.s32.totalorder %s1799_s21, %s1799_s21 }
  0x11   :  { %1672 = vmatprep.subr.mxu0 %v250_v31 }
  0x12   :  { %1673 = vmatpush3.msra.mxu0 %v250_v31  ;;  %p1806_p3 = por %p1805_p2, %p1804_p1 }
  0x13   :  { %1674 = vmatprep.subr.mxu0 %v249_v32 }
  0x14   :  { %1675 = vmatpush3.msra.mxu0 %v249_v32  ;;  %p1807_p4 = pnand %p1806_p3, %p1800_p0 }
  0x15   :  { %1676 = vmatprep.subr.mxu0 %v248_v33 }
  0x16   :  { %1677 = vmatpush3.msra.mxu0 %v248_v33 }
  0x17   :  { %1679 = vmatmul.mubr.msk.f32.vlgmr.msra.gmra.mxu0 %vm74_vm0, %v58_v15 }
  0xce   :  { %v1658_v21 = vpop.f32.mrf.mxu0  ;;  %v1669_v23 = vpop.f32.mrf.mxu1 }
  0xcf   :  { %v1972_v24 = vadd.f32 %v1669_v23, %v1545_v20  ;;  %v1990_v29 = vadd.f32 %v1658_v21, %v1542_v22  ;;  %v534_v21 = vld [vmem:[%s2166_s8] sm:$0xff] }
  0xd0   :  { %v147_v25 = vpop.f32.mrf.mxu0  ;;  %v239_v26 = vpop.f32.mrf.mxu1 }
  0xd1   :  { %v1974_v27 = vadd.f32 %v1542_v22, %v147_v25  ;;  %v1976_v28 = vadd.f32 %v1545_v20, %v239_v26  ;;  %541 = vrot.lane.b32.xlu0 %v1972_v24, %s1821_s18  ;;  %1681 = vmatprep.subr.msk.mxu1 %vm342_vm1, %v1972_v24  ;;  %v737_v26 = vld [vmem:[%s2166_s8 + $0x8] sm:$0xff] }
  0xd2   :  { %1682 = vmatpush3.xpose.msk.msra.mxu1 %vm342_vm1, %v1972_v24 }
  0xd3   :  { %1683 = vmatprep.subr.msk.mxu1 %vm342_vm1, %v1976_v28  ;;  %535 = vrot.lane.b32.xlu1 %v1974_v27, %s1821_s18 }
  0xd4   :  { %1685 = vmatprep.mubr.msk.f32.mxu1 %vm342_vm1, %v1974_v27 }
  0xd5   :  { %539 = vrot.lane.b32.xlu0 %v1976_v28, %s1821_s18 }
  0xd6   :  { %1684 = vmatpush3.xpose.msk.msra.mxu1 %vm342_vm1, %v1976_v28 }
  0xd7   :  { %537 = vrot.lane.b32.xlu1 %v1990_v29, %s1821_s18  ;;  %v1680_v58 = vpop.f32.mrf.mxu0 }
  0xd8   :  { %v2040_v60 = vadd.f32 %v1680_v58, %v1548_v59 }
  0xd9   :  { %1686 = vmatmul.mubr.msk.f32.vlgmr.msra.gmra.mxu1 %vm342_vm1, %v1990_v29  ;;  %v331_v1 = vpop.f32.mrf.mxu0 }
  0xda   :  { %1688 = vmatprep.subr.mxu0 %v2040_v60  ;;  %v2046_v2 = vadd.f32 %v1548_v59, %v331_v1 }
  0xdb   :  { %1689 = vmatpush3.msra.mxu0 %v2040_v60 }
  0xdc   :  { %1690 = vmatprep.subr.mxu0 %v2046_v2 }
  0xdd   :  { %1691 = vmatpush3.msra.mxu0 %v2046_v2 }
 0x143   :  { %v542_v34 = vpop.permute.xlu0 %541 }
 0x144   :  { %1695 = vmatprep.subr.msk.mxu1 %vm342_vm1, %v542_v34 }
 0x145   :  { %v536_v35 = vpop.permute.xlu1 %535  ;;  %1696 = vmatpush3.xpose.msk.msra.mxu1 %vm342_vm1, %v542_v34 }
 0x146   :  { %1699 = vmatprep.mubr.msk.f32.mxu1 %vm342_vm1, %v536_v35 }
 0x147   :  { %v540_v36 = vpop.permute.xlu0 %539 }
 0x148   :  { %1697 = vmatprep.subr.msk.mxu1 %vm342_vm1, %v540_v36 }
 0x149   :  { %1698 = vmatpush3.xpose.msk.msra.mxu1 %vm342_vm1, %v540_v36  ;;  %v538_v37 = vpop.permute.xlu1 %537 }
 0x14a   :  { %1714 = vmatprep.subr.mxu1 %v534_v21 }
 0x14c   :  { %1700 = vmatmul.mubr.msk.f32.vlgmr.msra.gmra.mxu1 %vm342_vm1, %v538_v37 }
 0x14d   :  { %1715 = vmatpush3.msra.mxu1 %v534_v21 }
 0x199   :  { %v1687_v39 = vpop.f32.mrf.mxu1 }
 0x19a   :  { %v427_v41 = vadd.f32 %v1687_v39, %v2022_v38 }
 0x19b   :  { %v421_v42 = vpop.f32.mrf.mxu1 }
 0x19c   :  { %v422_v43 = vadd.f32 %v421_v42, %v2027_v40  ;;  %v434_v44 = vsel %vm430_vm2, %v427_v41, -inf }
 0x19d   :  { %435 = vmax.xlane.f32.xlu1 %v434_v44 }
 0x19e   :  { %v431_v45 = vsel %vm430_vm2, %v422_v43, -inf }
 0x19f   :  { %432 = vmax.xlane.f32.xlu0 %v431_v45 }
 0x20c   :  { %v1701_v46 = vpop.f32.mrf.mxu1 }
 0x20d   :  { %v623_v49 = vadd.f32 %v1701_v46, %v2022_v38 }
 0x20e   :  { %v617_v47 = vpop.f32.mrf.mxu1 }
 0x20f   :  { %v618_v48 = vadd.f32 %v617_v47, %v2027_v40  ;;  %v629_v51 = vsel %vm430_vm2, %v623_v49, -inf }
 0x211   :  { %v626_v50 = vsel %vm430_vm2, %v618_v48, -inf }
 0x212   :  { %627 = vmax.xlane.f32.xlu0 %v626_v50 }
 0x216   :  { %630 = vmax.xlane.f32.xlu0 %v629_v51 }
 0x226   :  { %v436_v52 = vpop.xlane.xlu1 %435 }
 0x227   :  { %v438_v53 = vsub.f32 %v427_v41, %v436_v52 }
 0x228   :  { %v433_v54 = vpop.xlane.xlu0 %432 }
 0x229   :  { %v441_v55 = vmul.f32 1.442695, %v438_v53  ;;  %v437_v56 = vsub.f32 %v422_v43, %v433_v54 }
 0x22b   :  { %1763 = vpow2.f32 %v441_v55  ;;  %v439_v57 = vmul.f32 1.442695, %v437_v56 }
 0x22d   :  { %1765 = vpow2.f32 %v439_v57 }
 0x238   :  { %v1764_v61 = vpop.eup %1763 }
 0x239   :  { %v446_v62 = vsel %vm430_vm2, %v1764_v61, 0.0 }
 0x23a   :  { %v1766_v63 = vpop.eup %1765  ;;  %447 = vadd.xlane.f32.xlu0 %v446_v62 }
 0x23b   :  { %v443_v0 = vsel %vm430_vm2, %v1766_v63, 0.0 }
 0x23c   :  { %444 = vadd.xlane.f32.xlu1 %v443_v0 }
 0x29b   :  { %v628_v3 = vpop.xlane.xlu0 %627 }
 0x29c   :  { %v632_v4 = vsub.f32 %v618_v48, %v628_v3 }
 0x29e   :  { %v634_v5 = vmul.f32 1.442695, %v632_v4 }
 0x29f   :  { %v631_v6 = vpop.xlane.xlu0 %630 }
 0x2a0   :  { %1767 = vpow2.f32 %v634_v5  ;;  %v633_v7 = vsub.f32 %v623_v49, %v631_v6 }
 0x2a2   :  { %v636_v9 = vmul.f32 1.442695, %v633_v7 }
 0x2a4   :  { %1769 = vpow2.f32 %v636_v9 }
 0x2ad   :  { %v1768_v10 = vpop.eup %1767 }
 0x2ae   :  { %v638_v11 = vsel %vm430_vm2, %v1768_v10, 0.0 }
 0x2af   :  { %639 = vadd.xlane.f32.xlu1 %v638_v11 }
 0x2b1   :  { %v1770_v12 = vpop.eup %1769 }
 0x2b2   :  { %v641_v14 = vsel %vm430_vm2, %v1770_v12, 0.0 }
 0x2b3   :  { %642 = vadd.xlane.f32.xlu0 %v641_v14 }
 0x2c0   :  { %652 = vrot.lane.b32.xlu1 %v2040_v60, %s1821_s18 }
 0x2c3   :  { %v448_v15 = vpop.xlane.xlu0 %447 }
 0x2c4   :  { %906 = vrot.lane.b32.xlu1 %v1972_v24, %s1822_s11  ;;  %1771 = vrcp.f32 %v448_v15 }
 0x2c5   :  { %v445_v16 = vpop.xlane.xlu1 %444 }
 0x2c6   :  { %1773 = vrcp.f32 %v445_v16 }
 0x2c8   :  { %904 = vrot.lane.b32.xlu1 %v1976_v28, %s1822_s11 }
 0x2c9   :  { %650 = vrot.lane.b32.xlu0 %v2046_v2, %s1821_s18 }
 0x2cc   :  { %902 = vrot.lane.b32.xlu1 %v1990_v29, %s1822_s11 }
 0x2cd   :  { %900 = vrot.lane.b32.xlu0 %v1974_v27, %s1822_s11 }
 0x2d0   :  { %1188 = vrot.lane.b32.xlu1 %v1976_v28, %s1823_s27 }
 0x2d1   :  { %1190 = vrot.lane.b32.xlu0 %v1972_v24, %s1823_s27  ;;  %v1772_v17 = vpop.eup %1771 }
 0x2d2   :  { %v452_v20 = vmul.f32 %v1772_v17, %v1764_v61  ;;  %v1100_v17 = vld [vmem:[%s2166_s8 + $0x10] sm:$0xff] }
 0x2d3   :  { %v1774_v18 = vpop.eup %1773 }
 0x2d4   :  { %1186 = vrot.lane.b32.xlu1 %v1990_v29, %s1823_s27  ;;  %v451_v19 = vmul.f32 %v1774_v18, %v1766_v63 }
 0x2d5   :  { %1184 = vrot.lane.b32.xlu0 %v1974_v27, %s1823_s27 }
 0x2d6   :  { %1692 = vmatprep.mubr.msk.f32.mxu0 %vm430_vm2, %v451_v19 }
 0x2d7   :  { %1693 = vmatmul.mubr.msk.f32.vlgmr.msra.gmra.mxu0 %vm430_vm2, %v452_v20 }
 0x338   :  { %v640_v22 = vpop.xlane.xlu1 %639 }
 0x339   :  { %1775 = vrcp.f32 %v640_v22 }
 0x33c   :  { %v653_v23 = vpop.permute.xlu1 %652  ;;  %v643_v24 = vpop.xlane.xlu0 %642 }
 0x33d   :  { %1777 = vrcp.f32 %v643_v24  ;;  %1702 = vmatprep.subr.mxu0 %v653_v23 }
 0x33e   :  { %1703 = vmatpush3.msra.mxu0 %v653_v23 }
 0x340   :  { %v651_v25 = vpop.permute.xlu0 %650  ;;  %v907_v31 = vpop.permute.xlu1 %906 }
 0x341   :  { %1704 = vmatprep.subr.mxu0 %v651_v25 }
 0x342   :  { %1705 = vmatpush3.msra.mxu0 %v651_v25 }
 0x343   :  { %1709 = vmatprep.subr.mxu0 %v737_v26 }
 0x344   :  { %v901_v34 = vpop.permute.xlu0 %900  ;;  %v905_v36 = vpop.permute.xlu1 %904 }
 0x346   :  { %v1776_v27 = vpop.eup %1775 }
 0x347   :  { %v646_v28 = vmul.f32 %v1776_v27, %v1768_v10 }
 0x348   :  { %v1191_v39 = vpop.permute.xlu0 %1190  ;;  %v903_v41 = vpop.permute.xlu1 %902 }
 0x349   :  { %1706 = vmatprep.mubr.msk.f32.mxu0 %vm430_vm2, %v646_v28 }
 0x34a   :  { %v1778_v29 = vpop.eup %1777 }
 0x34b   :  { %v647_v30 = vmul.f32 %v1778_v29, %v1770_v12 }
 0x34c   :  { %v1185_v42 = vpop.permute.xlu0 %1184  ;;  %v1189_v43 = vpop.permute.xlu1 %1188 }
 0x34d   :  { %1707 = vmatmul.mubr.msk.f32.vlgmr.msra.gmra.mxu0 %vm430_vm2, %v647_v30 }
 0x34e   :  { %1710 = vmatpush3.msra.mxu0 %v737_v26 }
 0x34f   :  { %1719 = vmatprep.subr.msk.mxu0 %vm342_vm1, %v907_v31 }
 0x350   :  { %v1187_v44 = vpop.permute.xlu1 %1186 }
 0x397   :  { %v1694_v32 = vpop.f32.mrf.mxu0 }
 0x399   :  { %v525_v33 = vpop.f32.mrf.mxu0 }
 0x39a   :  { %1716 = vmatprep.mubr.msk.f32.mxu1 %vm342_vm1, %v525_v33 }
 0x39b   :  { %1717 = vmatmul.mubr.msk.f32.vlgmr.msra.gmra.mxu1 %vm342_vm1, %v1694_v32 }
 0x40d   :  { %v1708_v35 = vpop.f32.mrf.mxu0 }
 0x40f   :  { %v728_v37 = vpop.f32.mrf.mxu0 }
 0x410   :  { %1711 = vmatprep.mubr.msk.f32.mxu0 %vm342_vm1, %v728_v37 }
 0x411   :  { %1712 = vmatmul.mubr.msk.f32.vlgmr.msra.gmra.mxu0 %vm342_vm1, %v1708_v35 }
 0x412   :  { %1720 = vmatpush3.xpose.msk.msra.mxu0 %vm342_vm1, %v907_v31  ;;  %1723 = vmatprep.mubr.msk.f32.mxu0 %vm342_vm1, %v901_v34 }
 0x413   :  { %1721 = vmatprep.subr.msk.mxu0 %vm342_vm1, %v905_v36 }
 0x416   :  { %1722 = vmatpush3.xpose.msk.msra.mxu0 %vm342_vm1, %v905_v36  ;;  %v1384_v36 = vld [vmem:[%s2166_s8 + $0x18] sm:$0xff] }
 0x417   :  { %1738 = vmatprep.subr.msk.mxu0 %vm342_vm1, %v1191_v39 }
 0x419   :  { %1724 = vmatmul.mubr.msk.f32.vlgmr.msra.gmra.mxu0 %vm342_vm1, %v903_v41 }
 0x41a   :  { %1739 = vmatpush3.xpose.msk.msra.mxu0 %vm342_vm1, %v1191_v39  ;;  %1742 = vmatprep.mubr.msk.f32.mxu0 %vm342_vm1, %v1185_v42 }
 0x41b   :  { %1740 = vmatprep.subr.msk.mxu0 %vm342_vm1, %v1189_v43 }
 0x41e   :  { %1741 = vmatpush3.xpose.msk.msra.mxu0 %vm342_vm1, %v1189_v43 }
 0x421   :  { %1743 = vmatmul.mubr.msk.f32.vlgmr.msra.gmra.mxu0 %vm342_vm1, %v1187_v44 }
 0x45b   :  { %v1718_v27 = vpop.f32.mrf.mxu1 }
 0x45d   :  { %v891_v28 = vpop.f32.mrf.mxu1 }
 0x4d1   :  { %v2098_v45 = vpop.f32.mrf.mxu0 }
 0x4d2   :  { %v897_v37 = vadd.f32 %v1718_v27, %v2098_v45 }
 0x4d3   :  { %v2100_v46 = vpop.f32.mrf.mxu0 }
 0x4d4   :  { %v892_v41 = vadd.f32 %v891_v28, %v2100_v46 }
 0x4d9   :  { %v1725_v47 = vpop.f32.mrf.mxu0 }
 0x4da   :  { %v988_v48 = vadd.f32 %v1725_v47, %v2022_v38 }
 0x4db   :  { %v982_v49 = vpop.f32.mrf.mxu0 }
 0x4dc   :  { %v983_v50 = vadd.f32 %v982_v49, %v2027_v40  ;;  %v994_v51 = vsel %vm430_vm2, %v988_v48, -inf }
 0x4dd   :  { %995 = vmax.xlane.f32.xlu1 %v994_v51 }
 0x4de   :  { %v991_v52 = vsel %vm430_vm2, %v983_v50, -inf }
 0x4df   :  { %992 = vmax.xlane.f32.xlu0 %v991_v52 }
 0x4e1   :  { %v1744_v53 = vpop.f32.mrf.mxu0 }
 0x4e2   :  { %v1272_v10 = vadd.f32 %v1744_v53, %v2022_v38 }
 0x4e3   :  { %v1266_v54 = vpop.f32.mrf.mxu0 }
 0x4e4   :  { %v1267_v55 = vadd.f32 %v1266_v54, %v2027_v40  ;;  %v1278_v12 = vsel %vm430_vm2, %v1272_v10, -inf }
 0x4e6   :  { %v1275_v56 = vsel %vm430_vm2, %v1267_v55, -inf }
 0x4ee   :  { %1015 = vrot.lane.b32.xlu1 %v2040_v60, %s1822_s11 }
 0x512   :  { %1276 = vmax.xlane.f32.xlu1 %v1275_v56 }
 0x566   :  { %v996_v57 = vpop.xlane.xlu1 %995 }
 0x567   :  { %v998_v58 = vsub.f32 %v988_v48, %v996_v57 }
 0x568   :  { %v993_v59 = vpop.xlane.xlu0 %992 }
 0x569   :  { %v1001_v61 = vmul.f32 1.442695, %v998_v58  ;;  %v997_v62 = vsub.f32 %v983_v50, %v993_v59  ;;  %v1583_v50 = vld [vmem:[%s2170_s12] ss:$0 sm:$0xff] }
 0x56a   :  { %v1016_v63 = vpop.permute.xlu1 %1015 }
 0x56b   :  { %1779 = vpow2.f32 %v1001_v61  ;;  %v999_v0 = vmul.f32 1.442695, %v997_v62  ;;  %1726 = vmatprep.subr.mxu1 %v1016_v63 }
 0x56c   :  { %1727 = vmatpush3.msra.mxu1 %v1016_v63 }
 0x56d   :  { %1781 = vpow2.f32 %v999_v0 }
 0x578   :  { %v1780_v1 = vpop.eup %1779 }
 0x579   :  { %v1006_v3 = vsel %vm430_vm2, %v1780_v1, 0.0 }
 0x57a   :  { %v1782_v4 = vpop.eup %1781  ;;  %1007 = vadd.xlane.f32.xlu0 %v1006_v3 }
 0x57b   :  { %v1003_v40 = vsel %vm430_vm2, %v1782_v4, 0.0 }
 0x57e   :  { %1004 = vadd.xlane.f32.xlu0 %v1003_v40 }
 0x594   :  { %1013 = vrot.lane.b32.xlu0 %v2046_v2, %s1822_s11 }
 0x59b   :  { %v1277_v5 = vpop.xlane.xlu1 %1276 }
 0x59c   :  { %v1281_v6 = vsub.f32 %v1267_v55, %v1277_v5 }
 0x59e   :  { %v1283_v7 = vmul.f32 1.442695, %v1281_v6 }
 0x5a0   :  { %1783 = vpow2.f32 %v1283_v7 }
 0x5ad   :  { %v1784_v9 = vpop.eup %1783 }
 0x5ae   :  { %v1287_v11 = vsel %vm430_vm2, %v1784_v9, 0.0 }
 0x5af   :  { %1288 = vadd.xlane.f32.xlu1 %v1287_v11  ;;  %v1584_v11 = vld [vmem:[%s2171_s13] ss:$0 sm:$0xff] }
 0x5b3   :  { %1279 = vmax.xlane.f32.xlu0 %v1278_v12 }
 0x5c0   :  { %1299 = vrot.lane.b32.xlu1 %v2040_v60, %s1823_s27 }
 0x603   :  { %v1008_v14 = vpop.xlane.xlu0 %1007 }
 0x604   :  { %1785 = vrcp.f32 %v1008_v14 }
 0x607   :  { %v1005_v15 = vpop.xlane.xlu0 %1004 }
 0x608   :  { %1787 = vrcp.f32 %v1005_v15  ;;  %v1585_v15 = vld [vmem:[%s2172_s14] ss:$0 sm:$0xff] }
 0x60b   :  { %v1014_v16 = vpop.permute.xlu0 %1013 }
 0x60c   :  { %1728 = vmatprep.subr.mxu1 %v1014_v16 }
 0x60d   :  { %1729 = vmatpush3.msra.mxu1 %v1014_v16 }
 0x60e   :  { %1733 = vmatprep.subr.mxu1 %v1100_v17 }
 0x611   :  { %v1786_v38 = vpop.eup %1785 }
 0x612   :  { %v1012_v20 = vmul.f32 %v1786_v38, %v1780_v1 }
 0x615   :  { %v1788_v18 = vpop.eup %1787 }
 0x616   :  { %v1011_v19 = vmul.f32 %v1788_v18, %v1782_v4 }
 0x618   :  { %1730 = vmatprep.mubr.msk.f32.mxu1 %vm430_vm2, %v1011_v19 }
 0x619   :  { %1731 = vmatmul.mubr.msk.f32.vlgmr.msra.gmra.mxu1 %vm430_vm2, %v1012_v20 }
 0x61a   :  { %1734 = vmatpush3.msra.mxu1 %v1100_v17 }
 0x638   :  { %v1289_v60 = vpop.xlane.xlu1 %1288 }
 0x63c   :  { %v1300_v21 = vpop.permute.xlu1 %1299  ;;  %v1280_v22 = vpop.xlane.xlu0 %1279 }
 0x63d   :  { %v1282_v23 = vsub.f32 %v1272_v10, %v1280_v22  ;;  %1745 = vmatprep.subr.mxu1 %v1300_v21 }
 0x63f   :  { %v1285_v24 = vmul.f32 1.442695, %v1282_v23 }
 0x641   :  { %1789 = vpow2.f32 %v1285_v24 }
 0x642   :  { %1791 = vrcp.f32 %v1289_v60 }
 0x64e   :  { %v1790_v25 = vpop.eup %1789 }
 0x64f   :  { %v1290_v26 = vsel %vm430_vm2, %v1790_v25, 0.0  ;;  %v1792_v29 = vpop.eup %1791 }
 0x650   :  { %1291 = vadd.xlane.f32.xlu0 %v1290_v26  ;;  %v1295_v33 = vmul.f32 %v1792_v29, %v1784_v9 }
 0x666   :  { %1297 = vrot.lane.b32.xlu0 %v2046_v2, %s1823_s27 }
 0x6d9   :  { %v1732_v30 = vpop.f32.mrf.mxu1  ;;  %v1292_v31 = vpop.xlane.xlu0 %1291 }
 0x6da   :  { %1793 = vrcp.f32 %v1292_v31 }
 0x6db   :  { %v1091_v32 = vpop.f32.mrf.mxu1 }
 0x6dc   :  { %1735 = vmatprep.mubr.msk.f32.mxu1 %vm342_vm1, %v1091_v32 }
 0x6dd   :  { %1736 = vmatmul.mubr.msk.f32.vlgmr.msra.gmra.mxu1 %vm342_vm1, %v1732_v30  ;;  %v1298_v34 = vpop.permute.xlu0 %1297 }
 0x6de   :  { %1746 = vmatpush3.msra.mxu1 %v1300_v21  ;;  %1749 = vmatprep.mubr.msk.f32.mxu1 %vm430_vm2, %v1295_v33 }
 0x6df   :  { %1747 = vmatprep.subr.mxu1 %v1298_v34 }
 0x6e0   :  { %1748 = vmatpush3.msra.mxu1 %v1298_v34 }
 0x6e1   :  { %1752 = vmatprep.subr.mxu1 %v1384_v36 }
 0x6e7   :  { %v1794_v2 = vpop.eup %1793 }
 0x6e8   :  { %v1296_v35 = vmul.f32 %v1794_v2, %v1790_v25 }
 0x6ea   :  { %1750 = vmatmul.mubr.msk.f32.vlgmr.msra.gmra.mxu1 %vm430_vm2, %v1296_v35 }
 0x6eb   :  { %1753 = vmatpush3.msra.mxu1 %v1384_v36 }
 0x79d   :  { %v1737_v39 = vpop.f32.mrf.mxu1 }
 0x79e   :  { %v1183_v42 = vadd.f32 %v1737_v39, %v897_v37 }
 0x79f   :  { %v1173_v43 = vpop.f32.mrf.mxu1 }
 0x7a0   :  { %v1182_v44 = vadd.f32 %v1173_v43, %v892_v41 }
 0x7aa   :  { %v1751_v47 = vpop.f32.mrf.mxu1 }
 0x7ac   :  { %v1375_v48 = vpop.f32.mrf.mxu1 }
 0x7ad   :  { %1754 = vmatprep.mubr.msk.f32.mxu1 %vm342_vm1, %v1375_v48 }
 0x7ae   :  { %1755 = vmatmul.mubr.msk.f32.vlgmr.msra.gmra.mxu1 %vm342_vm1, %v1751_v47 }
 0x86e   :  { %v1756_v49 = vpop.f32.mrf.mxu1 }
 0x86f   :  { %v1467_v51 = vadd.f32 %v1756_v49, %v1183_v42 }
 0x870   :  { %v1457_v52 = vpop.f32.mrf.mxu1 }
 0x871   :  { %v1476_v45 = vadd.f32 %v1583_v50, %v1467_v51  ;;  %v1466_v53 = vadd.f32 %v1457_v52, %v1182_v44 }
 0x873   :  { %v1475_v54 = vadd.f32 %v1583_v50, %v1466_v53  ;;  %v1478_v46 = vadd.f32 %v1476_v45, %v1949_v13 }
 0x875   :  { %v1482_v55 = vsel %vm74_vm0, %v1478_v46, 0.0  ;;  %v1477_v56 = vadd.f32 %v1475_v54, %v1934_v8 }
 0x876   :  { %1483 = vadd.xlane.f32.xlu0 %v1482_v55 }
 0x877   :  { %v1479_v57 = vsel %vm74_vm0, %v1477_v56, 0.0 }
 0x878   :  { %1480 = vadd.xlane.f32.xlu1 %v1479_v57 }
 0x8ff   :  { %v1484_v58 = vpop.xlane.xlu0 %1483 }
 0x900   :  { %v1487_v59 = vmul.f32 0.03125, %v1484_v58 }
 0x901   :  { %v1481_v61 = vpop.xlane.xlu1 %1480 }
 0x902   :  { %v1489_v62 = vsub.f32 %v1478_v46, %v1487_v59  ;;  %v1486_v63 = vmul.f32 0.03125, %v1481_v61 }
 0x904   :  { %v1488_v0 = vsub.f32 %v1477_v56, %v1486_v63  ;;  %v1491_v1 = vmul.f32 %v1489_v62, %v1489_v62 }
 0x906   :  { %v1495_v3 = vsel %vm74_vm0, %v1491_v1, 0.0  ;;  %v1490_v4 = vmul.f32 %v1488_v0, %v1488_v0 }
 0x907   :  { %1496 = vadd.xlane.f32.xlu0 %v1495_v3 }
 0x908   :  { %v1492_v13 = vsel %vm74_vm0, %v1490_v4, 0.0 }
 0x909   :  { %1493 = vadd.xlane.f32.xlu1 %v1492_v13 }
 0x990   :  { %v1497_v40 = vpop.xlane.xlu0 %1496 }
 0x991   :  { %v1499_v8 = vmul.f32 0.03125, %v1497_v40 }
 0x992   :  { %v1494_v5 = vpop.xlane.xlu1 %1493 }
 0x993   :  { %v1501_v6 = vadd.f32 1e-05, %v1499_v8  ;;  %v1498_v7 = vmul.f32 0.03125, %v1494_v5 }
 0x995   :  { %1795 = vrsqrt.f32 %v1501_v6  ;;  %v1500_v9 = vadd.f32 1e-05, %v1498_v7 }
 0x997   :  { %1797 = vrsqrt.f32 %v1500_v9 }
 0x9a2   :  { %v1796_v10 = vpop.eup %1795 }
 0x9a3   :  { %v1505_v12 = vmul.f32 %v1796_v10, %v1489_v62 }
 0x9a4   :  { %v1798_v14 = vpop.eup %1797 }
 0x9a5   :  { %v1504_v16 = vmul.f32 %v1798_v14, %v1488_v0  ;;  %v1514_v17 = vmul.f32 %v1584_v11, %v1505_v12 }
 0x9a7   :  { %v1513_v38 = vmul.f32 %v1584_v11, %v1504_v16  ;;  %v1523_v18 = vadd.f32 %v1585_v15, %v1514_v17 }
 0x9a9   :  { %v1522_v19 = vadd.f32 %v1585_v15, %v1513_v38  ;;  %1525 = vst.msk [vmem:[#allocation2 + $0x8] sm:$0xff] %vm74_vm0, %v1523_v18 }
 0x9ab   :  { %1524 = vst.msk [vmem:[#allocation2] sm:$0xff] %vm74_vm0, %v1522_v19 }
 0x9ac   :  { %1810 = shalt.err (!%p1807_p4)
}
 0x9ad   :  { %s1825_s13 = smov 128   ;;  %s1826_s14 = smov 8  }
 0x9ae   :  { %1537 = dma.vmem_to_hbm [thread:$0]  %s1532_s20, 256, %s2173_s15, [#allocation3], %s1825_s13, %s1825_s13, %s1826_s14  }
 0x9af   :  { %1819 = dma.done.wait [#allocation3], 256  }
 0x9b0   :  { %1820 = vsyncadd [#allocation3], 4294967040 }
 0x9b1   :  { %1541 = vsyncpa [#allocation3], 1 }

</bundles_post_ra>
